<compile_context>
chip_gen: v7x
topology: tpu7x:2x2x1
jax: 0.10.0
libtpu: 0.0.40
codegen_flags: <defaults>
</compile_context>

<pallas_src>
import jax
import jax.numpy as jnp
from jax.experimental import pallas as pl
from jax.experimental.pallas import tpu as pltpu

# ----------------------------- model dimensions -----------------------------
N_BATCH = 2      # N
T_FRAMES = 8     # T
J_JOINTS = 8     # J (human joints; indices [1,2,4,5] must be valid)
H_LATENT = 32    # latent Phi dimension
H_HIDDEN = 64    # MLP hidden width
JR_DIM = 14      # YuMi dual-arm joint angles (2 x 7 DoF)
EW_JOINTS = 4    # elbow + wrist of both arms
EW_IDX = (1, 2, 4, 5)

QH_F = J_JOINTS * 4          # 32
PH_F = J_JOINTS * 3          # 24
PH_PAD = 32                  # ph padded to 32 lanes (zero cols 24..31)
JR_PAD = 16                  # Jr padded to 16 lanes in-kernel (cols 14,15 = 0)
FK_PAD = 32                  # fused FK output lanes (16 quat + 12 pos + 4 pad)
BLOCK_R_MAX = 256            # row block (256 fills the v6e/v7x MXU M dim)


def _round_up(x, m):
    return ((x + m - 1) // m) * m


# ------------------- packed parameter slab layouts (static) ------------------
# Weight slab: bf16, (TOTAL_ROWS, 128).  Each logical weight occupies `rows`
# sublanes (all multiples of 16 -> bf16 tile aligned) and its first `lanes`
# lanes; unused rows / lanes are zero.
_W_LAYOUT = (
    # name        rows  lanes
    ("Eh_w1",      32,   64),
    ("Eh_w2",      64,   32),
    ("DhDr_w1",    32,  128),   # Dh_w1 || Dr_w1 fused (lane-dense)
    ("Dh_w2",      64,   32),
    ("Dr_w2",      64,   16),   # 14 real cols + 2 zero pad
    ("Er_w1",      16,   64),   # 14 real rows + 2 zero pad
    ("Er_w2",      64,   32),
    ("Fk_w",       32,   32),   # [sin|cos] rows -> [quat|pos] cols, padded
    ("Gq",         32,   32),   # block-of-ones grouped-reduction matrix
    ("Cf_w",       32,   64),   # disc W1, rows permuted for the fake input
    ("Cr_wq",      32,   64),   # disc W1 rows scattered over Qh columns
    ("Cr_wp",      32,   64),   # disc W1 rows scattered over (padded) Ph cols
    ("C_w2",       64,    8),   # real col 0, 7 zero-pad cols
)
_W_OFFSETS = {}
_off = 0
for _name, _fi, _fo in _W_LAYOUT:
    _W_OFFSETS[_name] = (_off, _fi, _fo)
    _off += _fi
_W_ROWS = _off                                  # 560

# Bias slab: f32, one bias per row, first `width` lanes valid.
_B_LAYOUT = (
    ("Eh_b1", 64), ("Eh_b2", 32), ("DhDr_b1", 128), ("Dh_b2", 32),
    ("Dr_b2", 16), ("Er_b1", 64), ("Er_b2", 32), ("Fk_b", 32),
    ("C_b1", 64), ("C_b2", 8),
)
_B_OFFSETS = {name: (i, w) for i, (name, w) in enumerate(_B_LAYOUT)}
_B_ROWS = _round_up(len(_B_LAYOUT), 8)          # 16

# Lane-dense output slab: all segment offsets are 8-aligned, total width 256.
_SLAB_SEGMENTS = (
    ("Qh_hat", 32), ("Jr", 16), ("QPr", 32), ("Phi_h", 32),
    ("Phi_r", 32), ("Real_pred", 8), ("Fake_pred", 8),
)
_SLAB_OFF = {}
_off = 0
for _name, _w in _SLAB_SEGMENTS:
    _SLAB_OFF[_name] = _off
    _off += _w
_SLAB_USED = _off                               # 160
_SLAB_WIDTH = _round_up(_SLAB_USED, 128)        # 256


# ------------------------------- fused kernel -------------------------------
def _gan_fused_kernel(qh_ref, ph_ref, w_ref, b_ref, out_ref):
    """Entire GAN_model.forward on one (BLOCK_R, F) row block.

    qh_ref: (R, 32) f32, ph_ref: (R, 32) f32 (last 8 lanes zero),
    w_ref:  (560, 128) bf16 packed weights, b_ref: (16, 128) f32 packed biases,
    out_ref:(R, 256) f32 lane-dense output slab.
    """
    f32 = jnp.float32
    bf16 = jnp.bfloat16

    def w(name):
        off, fi, fo = _W_OFFSETS[name]
        return w_ref[off:off + fi, :fo]                       # bf16 (fi, fo)

    def b(name):
        row, width = _B_OFFSETS[name]
        return b_ref[row:row + 1, :width]                     # f32 (1, width)

    def dense(x, wname, bname, act=None):
        y = jnp.dot(x.astype(bf16), w(wname), preferred_element_type=f32)
        y = y + b(bname)
        if act == "relu":
            y = jnp.maximum(y, 0.0)
        elif act == "tanh":
            y = jnp.tanh(y)
        elif act == "sigmoid":
            y = jax.nn.sigmoid(y)
        return y

    qh = qh_ref[...]                                          # (R, 32)
    ph = ph_ref[...]                                          # (R, 32)
    rows = qh.shape[0]

    # ---- Eh: Phi_h = Eh(Qh) ----
    phi_h = dense(dense(qh, "Eh_w1", "Eh_b1", "relu"), "Eh_w2", "Eh_b2")

    # ---- Dh & Dr first layers fused into one lane-dense (32,128) matmul ----
    h12 = dense(phi_h, "DhDr_w1", "DhDr_b1", "relu")          # (R, 128)
    qh_hat = dense(h12[:, :H_HIDDEN], "Dh_w2", "Dh_b2")       # (R, 32)
    jr = jnp.pi * dense(h12[:, H_HIDDEN:], "Dr_w2", "Dr_b2", "tanh")  # (R,16)

    # ---- Fk: simplified YuMi forward kinematics ----
    # TODO(synk): Kinematics_for_yumi / YUMI_KINEMATIC_TREE is not provided;
    # replaced by a fused linear head on [sin|cos] joint features + quat norm.
    feat = jnp.concatenate([jnp.sin(jr), jnp.cos(jr)], axis=-1)      # (R, 32)
    fk = dense(feat, "Fk_w", "Fk_b")                                 # (R, 32)

    # Grouped quaternion normalization: one MXU dot with block-of-ones Gq.
    ss = jnp.dot((fk * fk).astype(bf16), w("Gq"), preferred_element_type=f32)
    lane = jax.lax.broadcasted_iota(jnp.int32, ss.shape, 1)
    scale = jnp.where(lane < EW_JOINTS * 4, jax.lax.rsqrt(ss + 1e-8), 1.0)
    qpr = fk * scale       # cols 0..15 unit quats, 16..27 positions, 28..31 = 0

    # ---- Discriminator (real + fake).  The per-joint (quat,pos) interleave
    # and the elbow/wrist gather are folded into permuted / scattered W1. ----
    real_h = jnp.maximum(
        jnp.dot(qh.astype(bf16), w("Cr_wq"), preferred_element_type=f32)
        + jnp.dot(ph.astype(bf16), w("Cr_wp"), preferred_element_type=f32)
        + b("C_b1"), 0.0)
    fake_h = dense(qpr, "Cf_w", "C_b1", "relu")
    real_pred = dense(real_h, "C_w2", "C_b2", "sigmoid")      # (R, 8), col 0
    fake_pred = dense(fake_h, "C_w2", "C_b2", "sigmoid")      # (R, 8), col 0

    # ---- Er: Phi_r = Er(Jr) (zero-padded Jr lanes hit zero Er_w1 rows) ----
    phi_r = dense(dense(jr, "Er_w1", "Er_b1", "relu"), "Er_w2", "Er_b2")

    # ---- single lane-dense 256-wide output slab, 8-aligned offsets ----
    pad = jnp.zeros((rows, _SLAB_WIDTH - _SLAB_USED), f32)
    out_ref[...] = jnp.concatenate(
        [qh_hat, jr, qpr, phi_h, phi_r, real_pred, fake_pred, pad], axis=-1)


# --------------------------- parameter packing -------------------------------
def _pack_params(params):
    """Pack all weights/biases into 2 lane-dense slabs (done in the wrapper)."""
    f32 = jnp.float32
    c_w1 = params["C_w1"]                       # (28, 64), interleaved layout

    # Row maps between the interleaved per-joint [quat(4), pos(3)] layout of the
    # reference discriminator input and the kernel's [all quats | all positions].
    q_rows = jnp.array([7 * g + c for g in range(EW_JOINTS) for c in range(4)])
    p_rows = jnp.array([7 * g + 4 + c for g in range(EW_JOINTS) for c in range(3)])
    cf_w = jnp.concatenate([c_w1[q_rows], c_w1[p_rows]], axis=0)     # (28, 64)

    # Real pass: scatter the same rows onto the full Qh / padded-Ph feature
    # columns (non elbow/wrist joints get zero rows) -> no gather in-kernel.
    qdst = jnp.array([4 * EW_IDX[g] + c for g in range(EW_JOINTS) for c in range(4)])
    pdst = jnp.array([3 * EW_IDX[g] + c for g in range(EW_JOINTS) for c in range(3)])
    cr_wq = jnp.zeros((QH_F, H_HIDDEN), f32).at[qdst].set(c_w1[q_rows])
    cr_wp = jnp.zeros((PH_PAD, H_HIDDEN), f32).at[pdst].set(c_w1[p_rows])

    # Fused FK head acting on 32-wide [sin(jr16) | cos(jr16)] features.
    fk_full = jnp.concatenate([params["Fk_wq"], params["Fk_wp"]], axis=1)  # (28,28)
    fk_w = (jnp.zeros((FK_PAD, FK_PAD), f32)
            .at[0:JR_DIM, 0:28].set(fk_full[0:JR_DIM])
            .at[JR_PAD:JR_PAD + JR_DIM, 0:28].set(fk_full[JR_DIM:]))
    fk_b = jnp.concatenate([params["Fk_bq"], params["Fk_bp"]], axis=0)     # (28,)

    # Block-of-ones grouped-reduction matrix for the per-joint quat norms.
    gq = jnp.zeros((FK_PAD, FK_PAD), f32).at[:16, :16].set(
        jnp.kron(jnp.eye(4, dtype=f32), jnp.ones((4, 4), f32)))

    weights = {
        "Eh_w1": params["Eh_w1"], "Eh_w2": params["Eh_w2"],
        "DhDr_w1": jnp.concatenate([params["Dh_w1"], params["Dr_w1"]], axis=1),
        "Dh_w2": params["Dh_w2"], "Dr_w2": params["Dr_w2"],
        "Er_w1": params["Er_w1"], "Er_w2": params["Er_w2"],
        "Fk_w": fk_w, "Gq": gq, "Cf_w": cf_w,
        "Cr_wq": cr_wq, "Cr_wp": cr_wp, "C_w2": params["C_w2"],
    }
    biases = {
        "Eh_b1": params["Eh_b1"], "Eh_b2": params["Eh_b2"],
        "DhDr_b1": jnp.concatenate([params["Dh_b1"], params["Dr_b1"]]),
        "Dh_b2": params["Dh_b2"], "Dr_b2": params["Dr_b2"],
        "Er_b1": params["Er_b1"], "Er_b2": params["Er_b2"],
        "Fk_b": fk_b, "C_b1": params["C_b1"], "C_b2": params["C_b2"],
    }

    w_slab = jnp.zeros((_W_ROWS, 128), jnp.bfloat16)
    for name, _, _ in _W_LAYOUT:
        off = _W_OFFSETS[name][0]
        mat = weights[name].astype(jnp.bfloat16)
        w_slab = w_slab.at[off:off + mat.shape[0], :mat.shape[1]].set(mat)

    b_slab = jnp.zeros((_B_ROWS, 128), f32)
    for name, _ in _B_LAYOUT:
        row = _B_OFFSETS[name][0]
        vec = biases[name].astype(f32)
        b_slab = b_slab.at[row, :vec.shape[0]].set(vec)
    return w_slab, b_slab


# ------------------------------ parameter init -------------------------------
def _init_linear(key, fan_in, fan_out):
    kw, kb = jax.random.split(key)
    w = 0.1 * jax.random.normal(kw, (fan_in, fan_out), jnp.float32)
    b = 0.01 * jax.random.normal(kb, (fan_out,), jnp.float32)
    return w, b


def init_params(seed=0):
    keys = jax.random.split(jax.random.PRNGKey(seed), 10)
    p = {}
    # Encoder_h: (J*4) -> hidden -> H_LATENT
    p["Eh_w1"], p["Eh_b1"] = _init_linear(keys[0], J_JOINTS * 4, H_HIDDEN)
    p["Eh_w2"], p["Eh_b2"] = _init_linear(keys[1], H_HIDDEN, H_LATENT)
    # Decoder_h: H_LATENT -> hidden -> J*4
    p["Dh_w1"], p["Dh_b1"] = _init_linear(keys[2], H_LATENT, H_HIDDEN)
    p["Dh_w2"], p["Dh_b2"] = _init_linear(keys[3], H_HIDDEN, J_JOINTS * 4)
    # Decoder_r: H_LATENT -> hidden -> JR_DIM (robot joint angles)
    p["Dr_w1"], p["Dr_b1"] = _init_linear(keys[4], H_LATENT, H_HIDDEN)
    p["Dr_w2"], p["Dr_b2"] = _init_linear(keys[5], H_HIDDEN, JR_DIM)
    # Encoder_r: JR_DIM -> hidden -> H_LATENT
    p["Er_w1"], p["Er_b1"] = _init_linear(keys[6], JR_DIM, H_HIDDEN)
    p["Er_w2"], p["Er_b2"] = _init_linear(keys[7], H_HIDDEN, H_LATENT)
    # Discriminator: (4 joints * (4+3)) -> hidden -> 1
    p["C_w1"], p["C_b1"] = _init_linear(keys[8], EW_JOINTS * 7, H_HIDDEN)
    p["C_w2"], p["C_b2"] = _init_linear(keys[9], H_HIDDEN, 1)
    # Simplified YuMi FK: [sin(Jr); cos(Jr)] -> quats / positions
    kq, kp = jax.random.split(jax.random.PRNGKey(seed + 1))
    p["Fk_wq"], p["Fk_bq"] = _init_linear(kq, 2 * JR_DIM, EW_JOINTS * 4)
    p["Fk_wp"], p["Fk_bp"] = _init_linear(kp, 2 * JR_DIM, EW_JOINTS * 3)
    return p


# --------------------------------- forward ----------------------------------
def gan_forward(params, Qh, Ph):
    """Mirror of GAN_model.forward(Qh, Ph) — one fused Pallas call."""
    n, t, j, _ = Qh.shape
    nt = n * t
    block_r = min(BLOCK_R_MAX, _round_up(nt, 8))
    rows = _round_up(nt, block_r)

    qh2d = Qh.reshape(nt, QH_F).astype(jnp.float32)
    ph2d = Ph.reshape(nt, PH_F).astype(jnp.float32)
    qh2d = jnp.pad(qh2d, ((0, rows - nt), (0, 0)))
    ph2d = jnp.pad(ph2d, ((0, rows - nt), (0, PH_PAD - PH_F)))

    w_slab, b_slab = _pack_params(params)

    slab = pl.pallas_call(
        _gan_fused_kernel,
        out_shape=jax.ShapeDtypeStruct((rows, _SLAB_WIDTH), jnp.float32),
        grid=(rows // block_r,),
        in_specs=[
            pl.BlockSpec((block_r, QH_F), lambda i: (i, 0)),
            pl.BlockSpec((block_r, PH_PAD), lambda i: (i, 0)),
            pl.BlockSpec((_W_ROWS, 128), lambda i: (0, 0)),   # resident weights
            pl.BlockSpec((_B_ROWS, 128), lambda i: (0, 0)),   # resident biases
        ],
        out_specs=pl.BlockSpec((block_r, _SLAB_WIDTH), lambda i: (i, 0)),
        compiler_params=pltpu.CompilerParams(
            dimension_semantics=("parallel",)),
    )(qh2d, ph2d, w_slab, b_slab)

    def seg(name, width):
        off = _SLAB_OFF[name]
        return slab[:nt, off:off + width]

    Qh_hat = seg("Qh_hat", J_JOINTS * 4).reshape(n, t, j, 4)
    Jr = seg("Jr", JR_DIM).reshape(n, t, JR_DIM)
    qpr = seg("QPr", EW_JOINTS * 7)
    Qr_ew = qpr[:, :EW_JOINTS * 4].reshape(n, t, EW_JOINTS, 4)
    Pr_ew = qpr[:, EW_JOINTS * 4:].reshape(n, t, EW_JOINTS, 3)
    Phi_h = seg("Phi_h", H_LATENT).reshape(n, t, H_LATENT)
    Phi_r = seg("Phi_r", H_LATENT).reshape(n, t, H_LATENT)
    Real_pred = seg("Real_pred", 1).reshape(n, t, 1)
    Fake_pred = seg("Fake_pred", 1).reshape(n, t, 1)

    # Pure static gathers of the raw inputs: done in the wrapper (layout only).
    ew = jnp.array(EW_IDX)
    Qh_ew = Qh[:, :, ew, :]
    Ph_ew = Ph[:, :, ew, :]

    return (Qh, Ph, Qh_hat, Qh_ew, Ph_ew, Jr, Qr_ew, Pr_ew,
            Phi_h, Phi_r, Real_pred, Fake_pred)


# --------------------------- pure-JAX reference ------------------------------
def gan_forward_ref(params, Qh, Ph):
    """Plain jnp reference with the same bf16-operand / f32-accumulate matmuls
    (original, unfused per-module weights) for correctness checking."""
    n, t, j, _ = Qh.shape
    nt = n * t
    bf16 = jnp.bfloat16

    def dense(x, w, bvec, act=None):
        y = jnp.dot(x.astype(bf16), w.astype(bf16),
                    preferred_element_type=jnp.float32) + bvec
        if act == "relu":
            y = jnp.maximum(y, 0.0)
        elif act == "tanh":
            y = jnp.tanh(y)
        elif act == "sigmoid":
            y = jax.nn.sigmoid(y)
        return y

    x = Qh.reshape(nt, j * 4).astype(jnp.float32)
    Phi_h2d = dense(dense(x, params["Eh_w1"], params["Eh_b1"], "relu"),
                    params["Eh_w2"], params["Eh_b2"])
    Qh_hat = dense(dense(Phi_h2d, params["Dh_w1"], params["Dh_b1"], "relu"),
                   params["Dh_w2"], params["Dh_b2"]).reshape(n, t, j, 4)
    Jr2d = jnp.pi * dense(dense(Phi_h2d, params["Dr_w1"], params["Dr_b1"], "relu"),
                          params["Dr_w2"], params["Dr_b2"], "tanh")
    feat = jnp.concatenate([jnp.sin(Jr2d), jnp.cos(Jr2d)], axis=-1)
    Qr = dense(feat, params["Fk_wq"], params["Fk_bq"]).reshape(n, t, EW_JOINTS, 4)
    Qr_ew = Qr * jax.lax.rsqrt(jnp.sum(Qr * Qr, axis=-1, keepdims=True) + 1e-8)
    Pr_ew = dense(feat, params["Fk_wp"], params["Fk_bp"]).reshape(n, t, EW_JOINTS, 3)
    QPr_ew = jnp.concatenate([Qr_ew, Pr_ew], axis=-1)
    ew = jnp.array(EW_IDX)
    Qh_ew = Qh[:, :, ew, :]
    Ph_ew = Ph[:, :, ew, :]
    QPh_ew = jnp.concatenate([Qh_ew, Ph_ew], axis=-1)

    def disc(qp):
        xq = qp.reshape(nt, EW_JOINTS * 7).astype(jnp.float32)
        hq = dense(xq, params["C_w1"], params["C_b1"], "relu")
        return dense(hq, params["C_w2"], params["C_b2"], "sigmoid").reshape(n, t, 1)

    Real_pred = disc(QPh_ew)
    Fake_pred = disc(QPr_ew)
    Phi_r = dense(dense(Jr2d, params["Er_w1"], params["Er_b1"], "relu"),
                  params["Er_w2"], params["Er_b2"]).reshape(n, t, H_LATENT)
    return (Qh, Ph, Qh_hat, Qh_ew, Ph_ew, Jr2d.reshape(n, t, JR_DIM), Qr_ew,
            Pr_ew, Phi_h2d.reshape(n, t, H_LATENT), Phi_r, Real_pred, Fake_pred)


# ----------------------------------- main ------------------------------------
if __name__ == "__main__":
    key = jax.random.PRNGKey(0)
    kq, kp = jax.random.split(key)

    # Qh: N x T x J x 4 unit quaternions, Ph: N x T x J x 3 positions
    Qh = jax.random.normal(kq, (N_BATCH, T_FRAMES, J_JOINTS, 4), jnp.float32)
    Qh = Qh / (jnp.linalg.norm(Qh, axis=-1, keepdims=True) + 1e-8)
    Ph = jax.random.normal(kp, (N_BATCH, T_FRAMES, J_JOINTS, 3), jnp.float32)

    params = init_params(seed=0)

    fwd = jax.jit(gan_forward)
    outputs = jax.block_until_ready(fwd(params, Qh, Ph))

    names = ["Qh", "Ph", "Qh_hat", "Qh_ew", "Ph_ew", "Jr", "Qr_ew", "Pr_ew",
             "Phi_h", "Phi_r", "Real_pred", "Fake_pred"]
    expected = {
        "Qh": (N_BATCH, T_FRAMES, J_JOINTS, 4),
        "Ph": (N_BATCH, T_FRAMES, J_JOINTS, 3),
        "Qh_hat": (N_BATCH, T_FRAMES, J_JOINTS, 4),
        "Qh_ew": (N_BATCH, T_FRAMES, 4, 4),
        "Ph_ew": (N_BATCH, T_FRAMES, 4, 3),
        "Jr": (N_BATCH, T_FRAMES, JR_DIM),
        "Qr_ew": (N_BATCH, T_FRAMES, 4, 4),
        "Pr_ew": (N_BATCH, T_FRAMES, 4, 3),
        "Phi_h": (N_BATCH, T_FRAMES, H_LATENT),
        "Phi_r": (N_BATCH, T_FRAMES, H_LATENT),
        "Real_pred": (N_BATCH, T_FRAMES, 1),
        "Fake_pred": (N_BATCH, T_FRAMES, 1),
    }
    for name, out in zip(names, outputs):
        assert out.shape == expected[name], (name, out.shape, expected[name])
        assert bool(jnp.all(jnp.isfinite(out))), name

    # Correctness vs. pure-JAX reference (bf16 MXU operands in both paths).
    ref_outputs = jax.jit(gan_forward_ref)(params, Qh, Ph)
    for name, got, ref in zip(names, outputs, ref_outputs):
        assert bool(jnp.allclose(got, ref, atol=2e-2, rtol=2e-2)), name

    print("KERNEL_OK")
</pallas_src>

<mosaic_0001>
module attributes {stable_mosaic.version = 11 : i64} {
  func.func @_gan_fused_kernel(%arg0: i32, %arg1: memref<16x32xf32, #tpu.memory_space<vmem>>, %arg2: memref<16x32xf32, #tpu.memory_space<vmem>>, %arg3: memref<560x128xbf16, #tpu.memory_space<vmem>>, %arg4: memref<16x128xf32, #tpu.memory_space<vmem>>, %arg5: memref<16x256xf32, #tpu.memory_space<vmem>>) attributes {dimension_semantics = [#tpu.dimension_semantics<parallel>], iteration_bounds = array<i64: 1>, scalar_prefetch = 0 : i64, scratch_operands = 0 : i64, tpu.core_type = #tpu.core_type<tc>, window_params = [{transform_indices = @transform_0, window_bounds = array<i64: 16, 32>}, {transform_indices = @transform_1, window_bounds = array<i64: 16, 32>}, {pipeline_mode = #tpu.pipeline_mode<synchronous>, transform_indices = @transform_2, window_bounds = array<i64: 560, 128>}, {pipeline_mode = #tpu.pipeline_mode<synchronous>, transform_indices = @transform_3, window_bounds = array<i64: 16, 128>}, {transform_indices = @transform_4, window_bounds = array<i64: 16, 256>}]} {
    %c0 = arith.constant 0 : index
    %c0_0 = arith.constant 0 : index
    %0 = vector.load %arg1[%c0, %c0_0] : memref<16x32xf32, #tpu.memory_space<vmem>>, vector<16x32xf32>
    %c0_1 = arith.constant 0 : index
    %c0_2 = arith.constant 0 : index
    %1 = vector.load %arg2[%c0_1, %c0_2] : memref<16x32xf32, #tpu.memory_space<vmem>>, vector<16x32xf32>
    %2 = arith.truncf %0 : vector<16x32xf32> to vector<16x32xbf16>
    %c0_3 = arith.constant 0 : index
    %c0_4 = arith.constant 0 : index
    %3 = vector.load %arg3[%c0_3, %c0_4] : memref<560x128xbf16, #tpu.memory_space<vmem>>, vector<32x64xbf16>
    %cst = arith.constant dense<0.000000e+00> : vector<16x64xf32>
    %4 = tpu.matmul %2, %3, %cst {dimension_numbers = #tpu.dot_dimension_numbers<[1], [0], [0], [1], [0, 0, 1, 1], [], []>} : vector<16x32xbf16>, vector<32x64xbf16>, vector<16x64xf32> -> vector<16x64xf32>
    %c0_5 = arith.constant 0 : index
    %c0_6 = arith.constant 0 : index
    %5 = vector.load %arg4[%c0_5, %c0_6] : memref<16x128xf32, #tpu.memory_space<vmem>>, vector<1x64xf32>
    %6 = vector.broadcast %5 : vector<1x64xf32> to vector<16x64xf32>
    %7 = arith.addf %4, %6 : vector<16x64xf32>
    %cst_7 = arith.constant 0.000000e+00 : f32
    %8 = vector.broadcast %cst_7 : f32 to vector<16x64xf32>
    %9 = arith.maximumf %7, %8 : vector<16x64xf32>
    %10 = arith.truncf %9 : vector<16x64xf32> to vector<16x64xbf16>
    %c32 = arith.constant 32 : index
    %c0_8 = arith.constant 0 : index
    %11 = vector.load %arg3[%c32, %c0_8] : memref<560x128xbf16, #tpu.memory_space<vmem>>, vector<64x32xbf16>
    %cst_9 = arith.constant dense<0.000000e+00> : vector<16x32xf32>
    %12 = tpu.matmul %10, %11, %cst_9 {dimension_numbers = #tpu.dot_dimension_numbers<[1], [0], [0], [1], [0, 0, 1, 1], [], []>} : vector<16x64xbf16>, vector<64x32xbf16>, vector<16x32xf32> -> vector<16x32xf32>
    %c1 = arith.constant 1 : index
    %c0_10 = arith.constant 0 : index
    %13 = vector.load %arg4[%c1, %c0_10] : memref<16x128xf32, #tpu.memory_space<vmem>>, vector<1x32xf32>
    %14 = vector.broadcast %13 : vector<1x32xf32> to vector<16x32xf32>
    %15 = arith.addf %12, %14 : vector<16x32xf32>
    %16 = arith.truncf %15 : vector<16x32xf32> to vector<16x32xbf16>
    %c96 = arith.constant 96 : index
    %c0_11 = arith.constant 0 : index
    %17 = vector.load %arg3[%c96, %c0_11] : memref<560x128xbf16, #tpu.memory_space<vmem>>, vector<32x128xbf16>
    %cst_12 = arith.constant dense<0.000000e+00> : vector<16x128xf32>
    %18 = tpu.matmul %16, %17, %cst_12 {dimension_numbers = #tpu.dot_dimension_numbers<[1], [0], [0], [1], [0, 0, 1, 1], [], []>} : vector<16x32xbf16>, vector<32x128xbf16>, vector<16x128xf32> -> vector<16x128xf32>
    %c2 = arith.constant 2 : index
    %c0_13 = arith.constant 0 : index
    %19 = vector.load %arg4[%c2, %c0_13] : memref<16x128xf32, #tpu.memory_space<vmem>>, vector<1x128xf32>
    %20 = vector.broadcast %19 : vector<1x128xf32> to vector<16x128xf32>
    %21 = arith.addf %18, %20 : vector<16x128xf32>
    %cst_14 = arith.constant 0.000000e+00 : f32
    %22 = vector.broadcast %cst_14 : f32 to vector<16x128xf32>
    %23 = arith.maximumf %21, %22 : vector<16x128xf32>
    %24 = vector.extract_strided_slice %23 {offsets = [0, 0], sizes = [16, 64], strides = [1, 1]} : vector<16x128xf32> to vector<16x64xf32>
    %25 = arith.truncf %24 : vector<16x64xf32> to vector<16x64xbf16>
    %c128 = arith.constant 128 : index
    %c0_15 = arith.constant 0 : index
    %26 = vector.load %arg3[%c128, %c0_15] : memref<560x128xbf16, #tpu.memory_space<vmem>>, vector<64x32xbf16>
    %cst_16 = arith.constant dense<0.000000e+00> : vector<16x32xf32>
    %27 = tpu.matmul %25, %26, %cst_16 {dimension_numbers = #tpu.dot_dimension_numbers<[1], [0], [0], [1], [0, 0, 1, 1], [], []>} : vector<16x64xbf16>, vector<64x32xbf16>, vector<16x32xf32> -> vector<16x32xf32>
    %c3 = arith.constant 3 : index
    %c0_17 = arith.constant 0 : index
    %28 = vector.load %arg4[%c3, %c0_17] : memref<16x128xf32, #tpu.memory_space<vmem>>, vector<1x32xf32>
    %29 = vector.broadcast %28 : vector<1x32xf32> to vector<16x32xf32>
    %30 = arith.addf %27, %29 : vector<16x32xf32>
    %31 = vector.extract_strided_slice %23 {offsets = [0, 64], sizes = [16, 64], strides = [1, 1]} : vector<16x128xf32> to vector<16x64xf32>
    %32 = arith.truncf %31 : vector<16x64xf32> to vector<16x64xbf16>
    %c192 = arith.constant 192 : index
    %c0_18 = arith.constant 0 : index
    %33 = vector.load %arg3[%c192, %c0_18] : memref<560x128xbf16, #tpu.memory_space<vmem>>, vector<64x16xbf16>
    %cst_19 = arith.constant dense<0.000000e+00> : vector<16x16xf32>
    %34 = tpu.matmul %32, %33, %cst_19 {dimension_numbers = #tpu.dot_dimension_numbers<[1], [0], [0], [1], [0, 0, 1, 1], [], []>} : vector<16x64xbf16>, vector<64x16xbf16>, vector<16x16xf32> -> vector<16x16xf32>
    %c4 = arith.constant 4 : index
    %c0_20 = arith.constant 0 : index
    %35 = vector.load %arg4[%c4, %c0_20] : memref<16x128xf32, #tpu.memory_space<vmem>>, vector<1x16xf32>
    %36 = vector.broadcast %35 : vector<1x16xf32> to vector<16x16xf32>
    %37 = arith.addf %34, %36 : vector<16x16xf32>
    %38 = math.tanh %37 : vector<16x16xf32>
    %cst_21 = arith.constant 3.14159274 : f32
    %39 = vector.broadcast %cst_21 : f32 to vector<16x16xf32>
    %40 = arith.mulf %39, %38 : vector<16x16xf32>
    %41 = math.sin %40 : vector<16x16xf32>
    %42 = math.cos %40 : vector<16x16xf32>
    %43 = tpu.concatenate %41, %42 in 1 : vector<16x16xf32>, vector<16x16xf32> -> vector<16x32xf32>
    %44 = arith.truncf %43 : vector<16x32xf32> to vector<16x32xbf16>
    %c336 = arith.constant 336 : index
    %c0_22 = arith.constant 0 : index
    %45 = vector.load %arg3[%c336, %c0_22] : memref<560x128xbf16, #tpu.memory_space<vmem>>, vector<32x32xbf16>
    %cst_23 = arith.constant dense<0.000000e+00> : vector<16x32xf32>
    %46 = tpu.matmul %44, %45, %cst_23 {dimension_numbers = #tpu.dot_dimension_numbers<[1], [0], [0], [1], [0, 0, 1, 1], [], []>} : vector<16x32xbf16>, vector<32x32xbf16>, vector<16x32xf32> -> vector<16x32xf32>
    %c7 = arith.constant 7 : index
    %c0_24 = arith.constant 0 : index
    %47 = vector.load %arg4[%c7, %c0_24] : memref<16x128xf32, #tpu.memory_space<vmem>>, vector<1x32xf32>
    %48 = vector.broadcast %47 : vector<1x32xf32> to vector<16x32xf32>
    %49 = arith.addf %46, %48 : vector<16x32xf32>
    %50 = arith.mulf %49, %49 : vector<16x32xf32>
    %51 = arith.truncf %50 : vector<16x32xf32> to vector<16x32xbf16>
    %c368 = arith.constant 368 : index
    %c0_25 = arith.constant 0 : index
    %52 = vector.load %arg3[%c368, %c0_25] : memref<560x128xbf16, #tpu.memory_space<vmem>>, vector<32x32xbf16>
    %cst_26 = arith.constant dense<0.000000e+00> : vector<16x32xf32>
    %53 = tpu.matmul %51, %52, %cst_26 {dimension_numbers = #tpu.dot_dimension_numbers<[1], [0], [0], [1], [0, 0, 1, 1], [], []>} : vector<16x32xbf16>, vector<32x32xbf16>, vector<16x32xf32> -> vector<16x32xf32>
    %54 = tpu.iota {dimensions = array<i32: 1>} : vector<16x32xi32>
    %c16_i32 = arith.constant 16 : i32
    %55 = vector.broadcast %c16_i32 : i32 to vector<16x32xi32>
    %56 = arith.cmpi slt, %54, %55 : vector<16x32xi32>
    %cst_27 = arith.constant 9.99999993E-9 : f32
    %57 = vector.broadcast %cst_27 : f32 to vector<16x32xf32>
    %58 = arith.addf %53, %57 : vector<16x32xf32>
    %59 = math.rsqrt %58 : vector<16x32xf32>
    %cst_28 = arith.constant 1.000000e+00 : f32
    %60 = vector.broadcast %cst_28 : f32 to vector<16x32xf32>
    %61 = arith.select %56, %59, %60 : vector<16x32xi1>, vector<16x32xf32>
    %62 = arith.mulf %49, %61 : vector<16x32xf32>
    %63 = arith.truncf %0 : vector<16x32xf32> to vector<16x32xbf16>
    %c432 = arith.constant 432 : index
    %c0_29 = arith.constant 0 : index
    %64 = vector.load %arg3[%c432, %c0_29] : memref<560x128xbf16, #tpu.memory_space<vmem>>, vector<32x64xbf16>
    %cst_30 = arith.constant dense<0.000000e+00> : vector<16x64xf32>
    %65 = tpu.matmul %63, %64, %cst_30 {dimension_numbers = #tpu.dot_dimension_numbers<[1], [0], [0], [1], [0, 0, 1, 1], [], []>} : vector<16x32xbf16>, vector<32x64xbf16>, vector<16x64xf32> -> vector<16x64xf32>
    %66 = arith.truncf %1 : vector<16x32xf32> to vector<16x32xbf16>
    %c464 = arith.constant 464 : index
    %c0_31 = arith.constant 0 : index
    %67 = vector.load %arg3[%c464, %c0_31] : memref<560x128xbf16, #tpu.memory_space<vmem>>, vector<32x64xbf16>
    %cst_32 = arith.constant dense<0.000000e+00> : vector<16x64xf32>
    %68 = tpu.matmul %66, %67, %cst_32 {dimension_numbers = #tpu.dot_dimension_numbers<[1], [0], [0], [1], [0, 0, 1, 1], [], []>} : vector<16x32xbf16>, vector<32x64xbf16>, vector<16x64xf32> -> vector<16x64xf32>
    %69 = arith.addf %65, %68 : vector<16x64xf32>
    %c8 = arith.constant 8 : index
    %c0_33 = arith.constant 0 : index
    %70 = vector.load %arg4[%c8, %c0_33] : memref<16x128xf32, #tpu.memory_space<vmem>>, vector<1x64xf32>
    %71 = vector.broadcast %70 : vector<1x64xf32> to vector<16x64xf32>
    %72 = arith.addf %69, %71 : vector<16x64xf32>
    %cst_34 = arith.constant 0.000000e+00 : f32
    %73 = vector.broadcast %cst_34 : f32 to vector<16x64xf32>
    %74 = arith.maximumf %72, %73 : vector<16x64xf32>
    %75 = arith.truncf %62 : vector<16x32xf32> to vector<16x32xbf16>
    %c400 = arith.constant 400 : index
    %c0_35 = arith.constant 0 : index
    %76 = vector.load %arg3[%c400, %c0_35] : memref<560x128xbf16, #tpu.memory_space<vmem>>, vector<32x64xbf16>
    %cst_36 = arith.constant dense<0.000000e+00> : vector<16x64xf32>
    %77 = tpu.matmul %75, %76, %cst_36 {dimension_numbers = #tpu.dot_dimension_numbers<[1], [0], [0], [1], [0, 0, 1, 1], [], []>} : vector<16x32xbf16>, vector<32x64xbf16>, vector<16x64xf32> -> vector<16x64xf32>
    %c8_37 = arith.constant 8 : index
    %c0_38 = arith.constant 0 : index
    %78 = vector.load %arg4[%c8_37, %c0_38] : memref<16x128xf32, #tpu.memory_space<vmem>>, vector<1x64xf32>
    %79 = vector.broadcast %78 : vector<1x64xf32> to vector<16x64xf32>
    %80 = arith.addf %77, %79 : vector<16x64xf32>
    %cst_39 = arith.constant 0.000000e+00 : f32
    %81 = vector.broadcast %cst_39 : f32 to vector<16x64xf32>
    %82 = arith.maximumf %80, %81 : vector<16x64xf32>
    %83 = arith.truncf %74 : vector<16x64xf32> to vector<16x64xbf16>
    %c496 = arith.constant 496 : index
    %c0_40 = arith.constant 0 : index
    %84 = vector.load %arg3[%c496, %c0_40] : memref<560x128xbf16, #tpu.memory_space<vmem>>, vector<64x8xbf16>
    %cst_41 = arith.constant dense<0.000000e+00> : vector<16x8xf32>
    %85 = tpu.matmul %83, %84, %cst_41 {dimension_numbers = #tpu.dot_dimension_numbers<[1], [0], [0], [1], [0, 0, 1, 1], [], []>} : vector<16x64xbf16>, vector<64x8xbf16>, vector<16x8xf32> -> vector<16x8xf32>
    %c9 = arith.constant 9 : index
    %c0_42 = arith.constant 0 : index
    %86 = vector.load %arg4[%c9, %c0_42] : memref<16x128xf32, #tpu.memory_space<vmem>>, vector<1x8xf32>
    %87 = vector.broadcast %86 : vector<1x8xf32> to vector<16x8xf32>
    %88 = arith.addf %85, %87 : vector<16x8xf32>
    %89 = arith.negf %88 : vector<16x8xf32>
    %90 = math.exp %89 : vector<16x8xf32>
    %cst_43 = arith.constant 1.000000e+00 : f32
    %91 = vector.broadcast %cst_43 : f32 to vector<16x8xf32>
    %92 = arith.addf %91, %90 : vector<16x8xf32>
    %93 = arith.divf %91, %92 : vector<16x8xf32>
    %94 = arith.truncf %82 : vector<16x64xf32> to vector<16x64xbf16>
    %c496_44 = arith.constant 496 : index
    %c0_45 = arith.constant 0 : index
    %95 = vector.load %arg3[%c496_44, %c0_45] : memref<560x128xbf16, #tpu.memory_space<vmem>>, vector<64x8xbf16>
    %cst_46 = arith.constant dense<0.000000e+00> : vector<16x8xf32>
    %96 = tpu.matmul %94, %95, %cst_46 {dimension_numbers = #tpu.dot_dimension_numbers<[1], [0], [0], [1], [0, 0, 1, 1], [], []>} : vector<16x64xbf16>, vector<64x8xbf16>, vector<16x8xf32> -> vector<16x8xf32>
    %c9_47 = arith.constant 9 : index
    %c0_48 = arith.constant 0 : index
    %97 = vector.load %arg4[%c9_47, %c0_48] : memref<16x128xf32, #tpu.memory_space<vmem>>, vector<1x8xf32>
    %98 = vector.broadcast %97 : vector<1x8xf32> to vector<16x8xf32>
    %99 = arith.addf %96, %98 : vector<16x8xf32>
    %100 = arith.negf %99 : vector<16x8xf32>
    %101 = math.exp %100 : vector<16x8xf32>
    %cst_49 = arith.constant 1.000000e+00 : f32
    %102 = vector.broadcast %cst_49 : f32 to vector<16x8xf32>
    %103 = arith.addf %102, %101 : vector<16x8xf32>
    %104 = arith.divf %102, %103 : vector<16x8xf32>
    %105 = arith.truncf %40 : vector<16x16xf32> to vector<16x16xbf16>
    %c256 = arith.constant 256 : index
    %c0_50 = arith.constant 0 : index
    %106 = vector.load %arg3[%c256, %c0_50] : memref<560x128xbf16, #tpu.memory_space<vmem>>, vector<16x64xbf16>
    %cst_51 = arith.constant dense<0.000000e+00> : vector<16x64xf32>
    %107 = tpu.matmul %105, %106, %cst_51 {dimension_numbers = #tpu.dot_dimension_numbers<[1], [0], [0], [1], [0, 0, 1, 1], [], []>} : vector<16x16xbf16>, vector<16x64xbf16>, vector<16x64xf32> -> vector<16x64xf32>
    %c5 = arith.constant 5 : index
    %c0_52 = arith.constant 0 : index
    %108 = vector.load %arg4[%c5, %c0_52] : memref<16x128xf32, #tpu.memory_space<vmem>>, vector<1x64xf32>
    %109 = vector.broadcast %108 : vector<1x64xf32> to vector<16x64xf32>
    %110 = arith.addf %107, %109 : vector<16x64xf32>
    %cst_53 = arith.constant 0.000000e+00 : f32
    %111 = vector.broadcast %cst_53 : f32 to vector<16x64xf32>
    %112 = arith.maximumf %110, %111 : vector<16x64xf32>
    %113 = arith.truncf %112 : vector<16x64xf32> to vector<16x64xbf16>
    %c272 = arith.constant 272 : index
    %c0_54 = arith.constant 0 : index
    %114 = vector.load %arg3[%c272, %c0_54] : memref<560x128xbf16, #tpu.memory_space<vmem>>, vector<64x32xbf16>
    %cst_55 = arith.constant dense<0.000000e+00> : vector<16x32xf32>
    %115 = tpu.matmul %113, %114, %cst_55 {dimension_numbers = #tpu.dot_dimension_numbers<[1], [0], [0], [1], [0, 0, 1, 1], [], []>} : vector<16x64xbf16>, vector<64x32xbf16>, vector<16x32xf32> -> vector<16x32xf32>
    %c6 = arith.constant 6 : index
    %c0_56 = arith.constant 0 : index
    %116 = vector.load %arg4[%c6, %c0_56] : memref<16x128xf32, #tpu.memory_space<vmem>>, vector<1x32xf32>
    %117 = vector.broadcast %116 : vector<1x32xf32> to vector<16x32xf32>
    %118 = arith.addf %115, %117 : vector<16x32xf32>
    %cst_57 = arith.constant 0.000000e+00 : f32
    %119 = vector.broadcast %cst_57 : f32 to vector<16x96xf32>
    %120 = tpu.concatenate %30, %40, %62, %15, %118, %93, %104, %119 in 1 : vector<16x32xf32>, vector<16x16xf32>, vector<16x32xf32>, vector<16x32xf32>, vector<16x32xf32>, vector<16x8xf32>, vector<16x8xf32>, vector<16x96xf32> -> vector<16x256xf32>
    %c0_58 = arith.constant 0 : index
    %c0_59 = arith.constant 0 : index
    %121 = vector.load %arg5[%c0_58, %c0_59] : memref<16x256xf32, #tpu.memory_space<vmem>>, vector<16x256xf32>
    tpu.vector_store %arg5[%c0_58, %c0_59], %120 {strides = array<i32>} : memref<16x256xf32, #tpu.memory_space<vmem>>, vector<16x256xf32>,
    return
  }
  func.func @transform_0(%arg0: i32) -> (i32, i32) {
    %c0_i32 = arith.constant 0 : i32
    %c0_i32_0 = arith.constant 0 : i32
    return %arg0, %c0_i32 : i32, i32
  }
  func.func @transform_1(%arg0: i32) -> (i32, i32) {
    %c0_i32 = arith.constant 0 : i32
    %c0_i32_0 = arith.constant 0 : i32
    return %arg0, %c0_i32 : i32, i32
  }
  func.func @transform_2(%arg0: i32) -> (i32, i32) {
    %c0_i32 = arith.constant 0 : i32
    %c0_i32_0 = arith.constant 0 : i32
    %c0_i32_1 = arith.constant 0 : i32
    return %c0_i32, %c0_i32_0 : i32, i32
  }
  func.func @transform_3(%arg0: i32) -> (i32, i32) {
    %c0_i32 = arith.constant 0 : i32
    %c0_i32_0 = arith.constant 0 : i32
    %c0_i32_1 = arith.constant 0 : i32
    return %c0_i32, %c0_i32_0 : i32, i32
  }
  func.func @transform_4(%arg0: i32) -> (i32, i32) {
    %c0_i32 = arith.constant 0 : i32
    %c0_i32_0 = arith.constant 0 : i32
    return %arg0, %c0_i32 : i32, i32
  }
}

</mosaic_0001>

<bundles_post_ra>
// kernel: gan_forward.1
= control target key start
LH: loop header
LB: loop body
LE: loop exit
PB: predicated region body
PF: predicated region fallthrough
CT: control target
= control target key end

     0   :  { %v1893_v0 = vmov 0.0   ;;  %vm1894_vm0 = vmmov 0   ;;  %vm44_vm1 = vcmask 261120   ;;  %vm129_vm2 = vcmask 523264   ;;  %s1895_s29 = smov 64   ;;  %s1896_s8 = smov 32   ;;  %s2289_s2 = inlined_call_operand.vmem [shape: bf16[560,128], index: 2, kind: input, shape index: {}]   ;;  %s2290_s0 = inlined_call_operand.vmem [shape: f32[16,32], index: 0, kind: input, shape index: {}]   ;;  %s2291_s3 = inlined_call_operand.vmem [shape: f32[16,128], index: 3, kind: input, shape index: {}]   ;;  %s2292_s1 = inlined_call_operand.vmem [shape: f32[16,32], index: 1, kind: input, shape index: {}]   ;;  %s2293_s4 = inlined_call_operand.vmem [shape: f32[16,256], index: 4, kind: output, shape index: {}]  }
   0x1   :  { %1664 = vmatprep.subr.bf16.mxu1 %v1893_v0  ;;  %v1826_v1 = vld [vmem:[%s2289_s2] sm:$0xff]   ;;  %1668 = vmatprep.mubr.msk.bf16.mxu1 %vm1894_vm0, %v1893_v0  ;;  %v1827_v2 = vld [vmem:[%s2289_s2 + $0x8] sm:$0xff]   ;;  %v1828_v5 = vld [vmem:[%s2289_s2 + $0x10] sm:$0xff]   ;;  %s1897_s9 = smov 80   ;;  %s1904_s12 = smov 16  }
   0x2   :  { %1684 = vmatprep.subr.bf16.mxu0 %v1893_v0  ;;  %1688 = vmatprep.mubr.msk.bf16.mxu0 %vm1894_vm0, %v1893_v0  ;;  %v18_v3 = vld [vmem:[%s2290_s0] sm:$0xff]  ;;  %v19_v4 = vld [vmem:[%s2290_s0 + $0x8] sm:$0xff]  ;;  %v1829_v7 = vld [vmem:[%s2289_s2 + $0x18] sm:$0xff]   ;;  %s1905_s20 = smov 48   ;;  %s1907_s6 = smov 24  }
   0x3   :  { %1665 = vmatpush3.bf16.msra.mxu1 %v1826_v1  ;;  %v1955_v6 = vpack.c.bf16 %v19_v4, %v18_v3  ;;  %v1830_v8 = vld [vmem:[%s2289_s2 + $0x20] sm:$0xff]   ;;  %v1831_v9 = vld [vmem:[%s2289_s2 + $0x28] sm:$0xff]   ;;  %v1832_v20 = vld [vmem:[%s2289_s2 + $0x30] sm:$0xff]  }
   0x4   :  { %1666 = vmatprep.subr.bf16.mxu1 %v1893_v0  ;;  %v1532_v10 = vld [vmem:[%s2291_s3] ss:$0 sm:$0xff]  ;;  %1685 = vmatpush3.bf16.msra.mxu0 %v1832_v20  ;;  %v1833_v21 = vld [vmem:[%s2289_s2 + $0x38] sm:$0xff]   ;;  %v1536_v22 = vld [vmem:[%s2291_s3 + $0x1] ss:$0 sm:$0xff] }
   0x5   :  { %1686 = vmatprep.subr.bf16.mxu0 %v1893_v0  ;;  %v1834_v29 = vld [vmem:[%s2289_s2 + $0x40] sm:$0xff]   ;;  %v1835_v31 = vld [vmem:[%s2289_s2 + $0x48] sm:$0xff]   ;;  %v1836_v32 = vld [vmem:[%s2289_s2 + $0x50] sm:$0xff]  }
   0x6   :  { %v1837_v33 = vld [vmem:[%s2289_s2 + $0x58] sm:$0xff]   ;;  %v1838_v34 = vld [vmem:[%s2289_s2 + $0x60] sm:$0xff]   ;;  %v1839_v35 = vld [vmem:[%s2289_s2 + $0x68] sm:$0xff]  }
   0x7   :  { %1667 = vmatpush3.bf16.msra.mxu1 %v1827_v2  ;;  %v1840_v36 = vld [vmem:[%s2289_s2 + $0x70] sm:$0xff]   ;;  %v1841_v37 = vld [vmem:[%s2289_s2 + $0x78] sm:$0xff]   ;;  %v1542_v38 = vld [vmem:[%s2291_s3 + $0x2] ss:$0 sm:$0xff] }
   0x8   :  { %1672 = vmatprep.subr.bf16.mxu1 %v1893_v0  ;;  %1687 = vmatpush3.bf16.msra.mxu0 %v1833_v21  ;;  %v1552_v53 = vld [vmem:[%s2291_s3 + $0x4] ss:$0 sm:$0xff]  ;;  %v1842_v60 = vld [vmem:[%s2289_s2 + $0xa8] sm:$0xff]  }
   0x9   :  { %1692 = vmatprep.subr.bf16.mxu0 %v1893_v0 }
   0xa   :  { %1669 = vmatmul.mubr.msk.bf16.vlgmr.msra.gmra.mrb[0].mxu1 %vm44_vm1, %v1955_v6 }
   0xb   :  { %1673 = vmatpush3.bf16.msra.mxu1 %v1828_v5  ;;  %1680 = vmatprep.mubr.msk.bf16.mxu1 %vm1894_vm0, %v1893_v0 }
   0xc   :  { %1674 = vmatprep.subr.bf16.mxu1 %v1893_v0 }
   0xf   :  { %1675 = vmatpush3.bf16.msra.mxu1 %v1829_v7 }
  0x10   :  { %1676 = vmatprep.subr.bf16.mxu1 %v1893_v0 }
  0x13   :  { %1677 = vmatpush3.bf16.msra.mxu1 %v1830_v8 }
  0x14   :  { %1678 = vmatprep.subr.bf16.mxu1 %v1893_v0 }
  0x17   :  { %1679 = vmatpush3.bf16.msra.mxu1 %v1831_v9 }
  0x18   :  { %1704 = vmatprep.subr.bf16.mxu1 %v1893_v0 }
  0xdd   :  { %v82_v11 = vpop.f32.mrb[0].mxu1 }
  0xde   :  { %v83_v12 = vadd.f32 %v1532_v10, %v82_v11  ;;  %v1670_v13 = vpop.f32.mrb[1].mxu1 }
  0xdf   :  { %v85_v14 = vpop.f32.mrb[2].mxu1 }
  0xe0   :  { %v86_v15 = vadd.f32 %v1532_v10, %v85_v14  ;;  %v1671_v16 = vpop.f32.mrb[3].mxu1  ;;  %v89_v17 = vmax.f32 %v83_v12, 0.0 }
  0xe2   :  { %v90_v18 = vmax.f32 %v86_v15, 0.0 }
  0xe4   :  { %v91_v19 = vpack.c.bf16 %v90_v18, %v89_v17 }
  0xe6   :  { %1681 = vmatmul.mubr.msk.bf16.vlgmr.msra.gmra.mrb[4].mxu1 %vm129_vm2, %v91_v19 }
  0xe7   :  { %1712 = vmatprep.mubr.msk.bf16.mxu1 %vm1894_vm0, %v1893_v0  ;;  %1705 = vmatpush3.bf16.msra.mxu1 %v1838_v34  ;;  %v1901_v34 = vmov 2102212464  }
  0xe8   :  { %1706 = vmatprep.subr.bf16.mxu1 %v1893_v0 }
  0xeb   :  { %1707 = vmatpush3.bf16.msra.mxu1 %v1839_v35 }
  0xec   :  { %1708 = vmatprep.subr.bf16.mxu1 %v1893_v0 }
  0xef   :  { %1709 = vmatpush3.bf16.msra.mxu1 %v1840_v36 }
  0xf0   :  { %1710 = vmatprep.subr.bf16.mxu1 %v1893_v0 }
  0xf3   :  { %1711 = vmatpush3.bf16.msra.mxu1 %v1841_v37  ;;  %v1902_v37 = vmov 920167782  }
  0xf4   :  { %1724 = vmatprep.subr.bf16.mxu1 %v1893_v0 }
 0x1b9   :  { %v167_v23 = vpop.f32.mrb[4].mxu1 }
 0x1ba   :  { %v1682_v24 = vpop.f32.mrb[5].mxu1  ;;  %v1992_v26 = vadd.f32 %v1536_v22, %v167_v23 }
 0x1bb   :  { %v170_v25 = vpop.f32.mrb[6].mxu1  ;;  %v1898_v24 = vmov 683565275  }
 0x1bc   :  { %v1994_v27 = vadd.f32 %v1536_v22, %v170_v25  ;;  %v1683_v28 = vpop.f32.mrb[7].mxu1 }
 0x1bd   :  { %v1899_v28 = vmov 2475754826  }
 0x1be   :  { %v174_v30 = vpack.c.bf16 %v1994_v27, %v1992_v26 }
 0x1c0   :  { %1689 = vmatmul.mubr.msk.bf16.vlgmr.msra.gmra.mrb[0].mxu0 %vm44_vm1, %v174_v30 }
 0x1c1   :  { %1693 = vmatpush3.bf16.msra.mxu0 %v1834_v29  ;;  %1700 = vmatprep.mubr.msk.bf16.mxu0 %vm1894_vm0, %v1893_v0 }
 0x1c2   :  { %1694 = vmatprep.subr.bf16.mxu0 %v1893_v0 }
 0x1c5   :  { %1695 = vmatpush3.bf16.msra.mxu0 %v1835_v31 }
 0x1c6   :  { %1696 = vmatprep.subr.bf16.mxu0 %v1893_v0 }
 0x1c9   :  { %1697 = vmatpush3.bf16.msra.mxu0 %v1836_v32 }
 0x1ca   :  { %1698 = vmatprep.subr.bf16.mxu0 %v1893_v0 }
 0x1cd   :  { %1699 = vmatpush3.bf16.msra.mxu0 %v1837_v33 }
 0x1ce   :  { %1716 = vmatprep.subr.bf16.mxu0 %v1893_v0 }
 0x293   :  { %v233_v39 = vpop.f32.mrb[0].mxu0 }
 0x294   :  { %v234_v40 = vadd.f32 %v1542_v38, %v233_v39  ;;  %v1690_v41 = vpop.f32.mrb[1].mxu0 }
 0x295   :  { %v236_v42 = vpop.f32.mrb[2].mxu0 }
 0x296   :  { %v237_v43 = vadd.f32 %v1542_v38, %v236_v42  ;;  %v1691_v44 = vpop.f32.mrb[3].mxu0  ;;  %v240_v45 = vmax.f32 %v234_v40, 0.0  ;;  %v1903_v40 = vmov 1326507024  }
 0x298   :  { %v241_v46 = vmax.f32 %v237_v43, 0.0 }
 0x29a   :  { %v242_v47 = vpack.c.bf16 %v241_v46, %v240_v45 }
 0x29c   :  { %338 = vrot.lane.b32.xlu0 %v242_v47, %s1895_s29  ;;  %1701 = vmatmul.mubr.msk.bf16.vlgmr.msra.gmra.mrb[4].mxu0 %vm129_vm2, %v242_v47 }
 0x29d   :  { %1720 = vmatprep.mubr.msk.bf16.mxu0 %vm1894_vm0, %v1893_v0  ;;  %1717 = vmatpush3.bf16.msra.mxu0 %v1842_v60 }
 0x29e   :  { %1718 = vmatprep.subr.bf16.mxu0 %v1893_v0 }
 0x30e   :  { %v339_v48 = vpop.permute.xlu0 %338 }
 0x30f   :  { %1713 = vmatmul.mubr.msk.bf16.vlgmr.msra.gmra.mrb[8].mxu1 %vm129_vm2, %v339_v48 }
 0x310   :  { %1728 = vmatprep.mubr.msk.bf16.mxu1 %vm1894_vm0, %v1893_v0 }
 0x36f   :  { %v2042_v49 = vpop.f32.mrb[4].mxu0 }
 0x370   :  { %v1702_v50 = vpop.f32.mrb[5].mxu0 }
 0x371   :  { %v2044_v51 = vpop.f32.mrb[6].mxu0 }
 0x372   :  { %v1703_v52 = vpop.f32.mrb[7].mxu0 }
 0x3e2   :  { %v401_v54 = vpop.f32.mrb[8].mxu1 }
 0x3e3   :  { %v402_v55 = vadd.f32 %v1552_v53, %v401_v54  ;;  %v1714_v56 = vpop.f32.mrb[9].mxu1 }
 0x3e4   :  { %v404_v57 = vpop.f32.mrb[10].mxu1 }
 0x3e5   :  { %1861 = vtanh.f32 %v402_v55  ;;  %v405_v58 = vadd.f32 %v1552_v53, %v404_v57  ;;  %v1715_v59 = vpop.f32.mrb[11].mxu1 }
 0x3e7   :  { %1863 = vtanh.f32 %v405_v58 }
 0x3ef   :  { %v1862_v61 = vpop.eup %1861 }
 0x3f0   :  { %v2053_v62 = vmul.f32 3.1415927, %v1862_v61 }
 0x3f1   :  { %v1864_v63 = vpop.eup %1863 }
 0x3f2   :  { %v415_v1 = vand.u32 2139095040, %v2053_v62  ;;  %v2056_v2 = vmul.f32 3.1415927, %v1864_v63  ;;  %1460 = vrot.lane.b32.xlu1 %v2053_v62, %s1896_s8  ;;  %v412_v3 = vand.u32 2147483647, %v2053_v62  ;;  %vm414_vm15 = vcmp.lt.s32.totalorder %v2053_v62, 0 }
 0x3f4   :  { %v416_v4 = vshrl.u32 %v415_v1, 23  ;;  %v519_v5 = vand.u32 2139095040, %v2056_v2  ;;  %v516_v7 = vand.u32 2147483647, %v2056_v2  ;;  %v419_v10 = vand.u32 8388607, %v412_v3 }
 0x3f5   :  { %vm2101_vm14 = vcmp.le.f32.partialorder %v412_v3, 0.7853982 }
 0x3f6   :  { %v1558_v8 = vadd.s32 4294967169, %v416_v4  ;;  %v520_v9 = vshrl.u32 %v519_v5, 23  ;;  %1462 = vrot.lane.b32.xlu1 %v2056_v2, %s1896_s8  ;;  %v523_v11 = vand.u32 8388607, %v516_v7  ;;  %v420_v15 = vor.u32 8388608, %v419_v10 }
 0x3f8   :  { %v422_v12 = vadd.s32 1, %v1558_v8  ;;  %v1562_v13 = vadd.s32 4294967169, %v520_v9  ;;  %v524_v17 = vor.u32 8388608, %v523_v11  ;;  %v2069_v22 = vshll.u32 %v420_v15, 8 }
 0x3fa   :  { %vm423_vm3 = vcmp.gt.s32.totalorder %v422_v12, 0  ;;  %v526_v14 = vadd.s32 1, %v1562_v13  ;;  %1478 = vrot.lane.b32.xlu1 %v1994_v27, %s1897_s9  ;;  %v2072_v30 = vshll.u32 %v524_v17, 8  ;;  %v1900_v27 = vmov 2131351028  }
 0x3fb   :  { %v424_v16 = vsel %vm423_vm3, %v422_v12, 0 }
 0x3fc   :  { %v426_v18 = vand.u32 31, %v424_v16  ;;  %vm527_vm4 = vcmp.gt.s32.totalorder %v526_v14, 0  ;;  %v425_v20 = vshrl.u32 %v424_v16, 5 }
 0x3fd   :  { %v528_v19 = vsel %vm527_vm4, %v526_v14, 0 }
 0x3fe   :  { %v427_v21 = vsub.s32 32, %v426_v18  ;;  %v530_v23 = vand.u32 31, %v528_v19  ;;  %v429_v25 = vshll.u32 %v1898_v24, %v426_v18  ;;  %v432_v29 = vshll.u32 %v1899_v28, %v426_v18 }
 0x3ff   :  { %v435_v33 = vshll.u32 %v1900_v27, %v426_v18  ;;  %v438_v36 = vshll.u32 %v1901_v34, %v426_v18  ;;  %v441_v39 = vshll.u32 %v1902_v37, %v426_v18  ;;  %vm444_vm5 = vcmp.lt.s32.totalorder %v425_v20, 1 }
 0x400   :  { %v430_v31 = vshrl.u32 %v1899_v28, %v427_v21  ;;  %v433_v32 = vshrl.u32 %v1900_v27, %v427_v21  ;;  %v436_v35 = vshrl.u32 %v1901_v34, %v427_v21  ;;  %v439_v38 = vshrl.u32 %v1902_v37, %v427_v21 }
 0x401   :  { %v442_v41 = vshrl.u32 %v1903_v40, %v427_v21  ;;  %vm447_vm6 = vcmp.lt.s32.totalorder %v425_v20, 4  ;;  %v531_v47 = vsub.s32 32, %v530_v23  ;;  %v428_v48 = vshrl.u32 %v1898_v24, %v427_v21 }
 0x402   :  { %v431_v42 = vor.u32 %v430_v31, %v429_v25  ;;  %v434_v43 = vor.u32 %v433_v32, %v432_v29  ;;  %v437_v44 = vor.u32 %v436_v35, %v435_v33  ;;  %v440_v45 = vor.u32 %v439_v38, %v438_v36 }
 0x403   :  { %v443_v46 = vor.u32 %v442_v41, %v441_v39  ;;  %vm445_vm7 = vcmp.lt.s32.totalorder %v425_v20, 2  ;;  %vm446_vm8 = vcmp.lt.s32.totalorder %v425_v20, 3  ;;  %v533_v63 = vshll.u32 %v1898_v24, %v530_v23 }
 0x404   :  { %v449_v50 = vsel %vm447_vm6, %v437_v44, 2102212464  ;;  %v452_v52 = vsel %vm444_vm5, %v431_v42, %v434_v43  ;;  %v456_v53 = vsel %vm444_vm5, %v434_v43, %v437_v44  ;;  %v453_v54 = vsel %vm447_vm6, %v440_v45, 920167782 }
 0x405   :  { %v457_v55 = vsel %vm447_vm6, %v443_v46, 1326507024  ;;  %v448_v56 = vsel %vm444_vm5, %v428_v48, %v431_v42  ;;  %v450_v57 = vsel %vm446_vm8, %v434_v43, %v449_v50  ;;  %v454_v58 = vsel %vm446_vm8, %v437_v44, %v453_v54 }
 0x406   :  { %v458_v59 = vsel %vm446_vm8, %v440_v45, %v457_v55  ;;  %v455_v60 = vsel %vm445_vm7, %v452_v52, %v454_v58  ;;  %v534_v1 = vshrl.u32 %v1899_v28, %v531_v47  ;;  %v529_v10 = vshrl.u32 %v528_v19, 5 }
 0x407   :  { %v459_v61 = vsel %vm445_vm7, %v456_v53, %v458_v59  ;;  %v2081_v8 = vmul.u32.u64.low %v2069_v22, %v455_v60  ;;  %v2082_v9 = vmul.u32.u64.high %v2069_v22, %v455_v60, %v2081_v8  ;;  %v451_v11 = vsel %vm445_vm7, %v448_v56, %v450_v57 }
 0x408   :  { %v2077_v4 = vmul.u32.u64.low %v2069_v22, %v459_v61  ;;  %v2078_v5 = vmul.u32.u64.high %v2069_v22, %v459_v61, %v2077_v4  ;;  %v536_v12 = vshll.u32 %v1899_v28, %v530_v23  ;;  %v537_v13 = vshrl.u32 %v1900_v27, %v531_v47 }
 0x409   :  { %v535_v14 = vor.u32 %v534_v1, %v533_v63  ;;  %v539_v15 = vshll.u32 %v1900_v27, %v530_v23  ;;  %v540_v16 = vshrl.u32 %v1901_v34, %v531_v47  ;;  %v543_v17 = vshrl.u32 %v1902_v37, %v531_v47 }
 0x40a   :  { %v538_v18 = vor.u32 %v537_v13, %v536_v12  ;;  %v542_v20 = vshll.u32 %v1901_v34, %v530_v23  ;;  %v545_v21 = vshll.u32 %v1902_v37, %v530_v23  ;;  %v546_v25 = vshrl.u32 %v1903_v40, %v531_v47 }
 0x40b   :  { %v467_v29 = vmul.u32 %v2069_v22, %v451_v11  ;;  %vm469_vm9 = vc.u32 %v2078_v5, %v2081_v8  ;;  %v470_v31 = vadd.s32 1, %v2082_v9  ;;  %v541_v32 = vor.u32 %v540_v16, %v539_v15 }
 0x40c   :  { %v544_v19 = vor.u32 %v543_v17, %v542_v20  ;;  %v547_v33 = vor.u32 %v546_v25, %v545_v21  ;;  %vm548_vm10 = vcmp.lt.s32.totalorder %v529_v10, 1  ;;  %vm551_vm11 = vcmp.lt.s32.totalorder %v529_v10, 4 }
 0x40d   :  { %v471_v28 = vsel %vm469_vm9, %v470_v31, %v2082_v9  ;;  %v532_v27 = vshrl.u32 %v1898_v24, %v531_v47  ;;  %v553_v35 = vsel %vm551_vm11, %v541_v32, 2102212464  ;;  %v556_v34 = vsel %vm548_vm10, %v535_v14, %v538_v18 }
 0x40e   :  { %v472_v23 = vadd.s32 %v471_v28, %v467_v29  ;;  %vm550_vm12 = vcmp.lt.s32.totalorder %v529_v10, 3  ;;  %v557_v36 = vsel %vm551_vm11, %v544_v19, 920167782  ;;  %v560_v22 = vsel %vm548_vm10, %v538_v18, %v541_v32 }
 0x40f   :  { %vm549_vm13 = vcmp.lt.s32.totalorder %v529_v10, 2  ;;  %v552_v37 = vsel %vm548_vm10, %v532_v27, %v535_v14  ;;  %v558_v38 = vsel %vm550_vm12, %v541_v32, %v557_v36  ;;  %v561_v39 = vsel %vm551_vm11, %v547_v33, 1326507024 }
 0x410   :  { %v473_v40 = vadd.s32 536870912, %v472_v23  ;;  %v554_v41 = vsel %vm550_vm12, %v538_v18, %v553_v35  ;;  %v559_v42 = vsel %vm549_vm13, %v556_v34, %v558_v38  ;;  %v562_v43 = vsel %vm550_vm12, %v544_v19, %v561_v39 }
 0x411   :  { %v563_v44 = vsel %vm549_vm13, %v560_v22, %v562_v43  ;;  %v2092_v45 = vmul.u32.u64.low %v2072_v30, %v559_v42  ;;  %v2093_v46 = vmul.u32.u64.high %v2072_v30, %v559_v42, %v2092_v45  ;;  %v555_v50 = vsel %vm549_vm13, %v552_v37, %v554_v41 }
 0x412   :  { %v474_v24 = vshrl.u32 %v473_v40, 30  ;;  %v2096_v47 = vmul.u32.u64.low %v2072_v30, %v563_v44  ;;  %v2097_v48 = vmul.u32.u64.high %v2072_v30, %v563_v44, %v2096_v47  ;;  %v571_v58 = vmul.u32 %v2072_v30, %v555_v50 }
 0x413   :  { %v574_v55 = vadd.s32 1, %v2093_v46  ;;  %v468_v30 = vadd.s32 %v2081_v8, %v2078_v5  ;;  %vm518_vm6 = vcmp.lt.s32.totalorder %v2056_v2, 0  ;;  %vm517_vm7 = vcmp.le.f32.partialorder %v516_v7, 0.7853982 }
 0x414   :  { %v475_v52 = vshll.u32 %v474_v24, 30  ;;  %v498_v53 = vsub.s32 4, %v474_v24  ;;  %vm573_vm3 = vc.u32 %v2097_v48, %v2092_v45  ;;  %v572_v34 = vadd.s32 %v2092_v45, %v2097_v48 }
 0x415   :  { %v575_v3 = vsel %vm573_vm3, %v574_v55, %v2093_v46 }
 0x416   :  { %v476_v56 = vsub.s32 %v472_v23, %v475_v52  ;;  %v499_v57 = vsel %vm414_vm15, %v498_v53, %v474_v24  ;;  %v576_v61 = vadd.s32 %v575_v3, %v571_v58 }
 0x417   :  { %v501_v59 = vsel %vm2101_vm14, 0, %v499_v57 }
 0x418   :  { %v478_v60 = vsub.s32 0, %v476_v56  ;;  %v577_v1 = vadd.s32 536870912, %v576_v61  ;;  %v505_v45 = vadd.s32 3, %v501_v59  ;;  %v713_v48 = vand.u32 3, %v501_v59 }
 0x41a   :  { %v1559_v63 = vmin.u32 %v478_v60, %v476_v56  ;;  %v578_v9 = vshrl.u32 %v577_v1, 30  ;;  %v506_v50 = vand.u32 3, %v505_v45  ;;  %vm718_vm8 = vcmp.eq.s32.totalorder %v713_v48, 2 }
 0x41b   :  { %vm715_vm11 = vcmp.eq.s32.totalorder %v713_v48, 0  ;;  %vm714_vm13 = vcmp.lt.s32.totalorder %v713_v48, 2 }
 0x41c   :  { %v480_v4 = vclz %v1559_v63  ;;  %v579_v11 = vshll.u32 %v578_v9, 30  ;;  %v602_v24 = vsub.s32 4, %v578_v9  ;;  %vm511_vm9 = vcmp.eq.s32.totalorder %v506_v50, 2 }
 0x41d   :  { %vm508_vm10 = vcmp.eq.s32.totalorder %v506_v50, 0  ;;  %vm507_vm12 = vcmp.lt.s32.totalorder %v506_v50, 2  ;;  %v1849_v50 = vld [vmem:[%s2289_s2 + $0xe0] sm:$0xff]  }
 0x41e   :  { %v1560_v10 = vadd.s32 4294967294, %v480_v4  ;;  %v580_v13 = vsub.s32 %v576_v61, %v579_v11  ;;  %v603_v53 = vsel %vm518_vm6, %v602_v24, %v578_v9 }
 0x41f   :  { %v605_v3 = vsel %vm517_vm7, 0, %v603_v53  ;;  %v1851_v53 = vld [vmem:[%s2289_s2 + $0x100] sm:$0xff]  }
 0x420   :  { %vm1561_vm4 = vcmp.lt.s32.totalorder %v1560_v10, 0  ;;  %v582_v16 = vsub.s32 0, %v580_v13  ;;  %v609_v1 = vadd.s32 3, %v605_v3 }
 0x421   :  { %v483_v12 = vsel %vm1561_vm4, 0, %v1560_v10 }
 0x422   :  { %v484_v14 = vsub.s32 32, %v483_v12  ;;  %v488_v15 = vsub.s32 4294967266, %v483_v12  ;;  %v485_v17 = vshll.u32 %v476_v56, %v483_v12  ;;  %v1563_v21 = vmin.u32 %v582_v16, %v580_v13 }
 0x423   :  { %v610_v11 = vand.u32 3, %v609_v1  ;;  %v816_v12 = vand.u32 3, %v605_v3  ;;  %v1854_v3 = vld [vmem:[%s2289_s2 + $0x110] sm:$0xff]  }
 0x424   :  { %v486_v18 = vshrl.u32 %v468_v30, %v484_v14  ;;  %v489_v20 = vadd.s32 127, %v488_v15  ;;  %v584_v31 = vclz %v1563_v21 }
 0x425   :  { %vm821_vm3 = vcmp.eq.s32.totalorder %v816_v12, 2  ;;  %vm612_vm4 = vcmp.eq.s32.totalorder %v610_v11, 0 }
 0x426   :  { %v487_v25 = vor.u32 %v486_v18, %v485_v17  ;;  %v490_v29 = vshll.u32 %v489_v20, 23  ;;  %v1564_v19 = vadd.s32 4294967294, %v584_v31 }
 0x428   :  { %v491_v32 = vor.u32 4788187, %v490_v29  ;;  %v494_v28 = vcvt.s32.f32 %v487_v25  ;;  %vm1565_vm5 = vcmp.lt.s32.totalorder %v1564_v19, 0 }
 0x429   :  { %v587_v35 = vsel %vm1565_vm5, 0, %v1564_v19  ;;  %vm818_vm5 = vcmp.eq.s32.totalorder %v816_v12, 0 }
 0x42a   :  { %v492_v33 = vand.u32 2147483647, %v491_v32  ;;  %v588_v5 = vsub.s32 32, %v587_v35  ;;  %v592_v8 = vsub.s32 4294967266, %v587_v35  ;;  %v589_v36 = vshll.u32 %v580_v13, %v587_v35  ;;  %v1843_v13 = vld [vmem:[%s2289_s2 + $0xb0] sm:$0xff]  }
 0x42b   :  { %1719 = vmatpush3.bf16.msra.mxu0 %v1843_v13 }
 0x42c   :  { %v495_v27 = vmul.f32 %v494_v28, %v492_v33  ;;  %v590_v22 = vshrl.u32 %v572_v34, %v588_v5  ;;  %v593_v37 = vadd.s32 127, %v592_v8  ;;  %1732 = vmatprep.subr.bf16.mxu0 %v1893_v0  ;;  %v1844_v8 = vld [vmem:[%s2289_s2 + $0xb8] sm:$0xff]  }
 0x42d   :  { %1725 = vmatpush3.bf16.msra.mxu1 %v1844_v8 }
 0x42e   :  { %v496_v23 = vxor.u32 2147483648, %v495_v27  ;;  %v591_v40 = vor.u32 %v590_v22, %v589_v36  ;;  %v594_v41 = vshll.u32 %v593_v37, 23  ;;  %1726 = vmatprep.subr.bf16.mxu1 %v1893_v0  ;;  %v1848_v36 = vld [vmem:[%s2289_s2 + $0xf0] sm:$0xff]   ;;  %v20_v22 = vld [vmem:[%s2292_s1] sm:$0xff]  ;;  %v21_v37 = vld [vmem:[%s2292_s1 + $0x8] sm:$0xff] }
 0x430   :  { %v497_v38 = vsel %vm414_vm15, %v496_v23, %v495_v27  ;;  %v595_v42 = vor.u32 4788187, %v594_v41  ;;  %v598_v44 = vcvt.s32.f32 %v591_v40  ;;  %vm615_vm15 = vcmp.eq.s32.totalorder %v610_v11, 2  ;;  %v1846_v23 = vld [vmem:[%s2289_s2 + $0xe8] sm:$0xff]  }
 0x431   :  { %v500_v39 = vsel %vm2101_vm14, %v2053_v62, %v497_v38  ;;  %vm504_vm14 = vweird.f32 %v2053_v62  ;;  %v979_v38 = vpack.c.bf16 %v21_v37, %v20_v22 }
 0x432   :  { %1865 = vcosq.f32 %v500_v39  ;;  %v596_v43 = vand.u32 2147483647, %v595_v42 }
 0x433   :  { %1867 = vsinq.f32 %v500_v39  ;;  %v1574_v39 = vld [vmem:[%s2291_s3 + $0x7] ss:$0 sm:$0xff] }
 0x434   :  { %v599_v46 = vmul.f32 %v598_v44, %v596_v43 }
 0x436   :  { %v600_v47 = vxor.u32 2147483648, %v599_v46 }
 0x438   :  { %v601_v52 = vsel %vm518_vm6, %v600_v47, %v599_v46  ;;  %vm611_vm6 = vcmp.lt.s32.totalorder %v610_v11, 2  ;;  %v1847_v47 = vld [vmem:[%s2289_s2 + $0xd8] sm:$0xff]  }
 0x439   :  { %v604_v55 = vsel %vm517_vm7, %v2056_v2, %v601_v52  ;;  %vm817_vm7 = vcmp.lt.s32.totalorder %v816_v12, 2  ;;  %v1850_v52 = vld [vmem:[%s2289_s2 + $0xf8] sm:$0xff]   ;;  %v1587_v12 = vld [vmem:[%s2291_s3 + $0x8] ss:$0 sm:$0xff] }
 0x43a   :  { %1869 = vcosq.f32 %v604_v55 }
 0x43b   :  { %1871 = vsinq.f32 %v604_v55 }
 0x43c   :  { %v1866_v54 = vpop.eup %1865 }
 0x43d   :  { %v1868_v56 = vpop.eup %1867  ;;  %v512_v57 = vxor.u32 2147483648, %v1866_v54 }
 0x43e   :  { %v509_v58 = vxor.u32 2147483648, %v1868_v56 }
 0x43f   :  { %v513_v59 = vsel %vm511_vm9, %v512_v57, %v1868_v56  ;;  %v720_v60 = vsel %vm718_vm8, %v512_v57, %v1868_v56  ;;  %vm608_vm8 = vweird.f32 %v2056_v2  ;;  %vm834_vm9 = vcmask 130048   ;;  %v1852_v56 = vld [vmem:[%s2289_s2 + $0x108] sm:$0xff]  }
 0x440   :  { %v510_v61 = vsel %vm508_vm10, %v1866_v54, %v509_v58  ;;  %v717_v7 = vsel %vm715_vm11, %v1866_v54, %v509_v58  ;;  %v1853_v58 = vld [vmem:[%s2289_s2 + $0xc8] sm:$0xff]   ;;  %vm1514_vm11 = vcmask 916480  }
 0x441   :  { %v514_v63 = vsel %vm507_vm12, %v510_v61, %v513_v59  ;;  %v721_v4 = vsel %vm714_vm13, %v717_v7, %v720_v60  ;;  %v1855_v59 = vld [vmem:[%s2289_s2 + $0xd0] sm:$0xff]   ;;  %vm1519_vm12 = vcmask 195584  }
 0x442   :  { %v515_v9 = vsel %vm504_vm14, nan, %v514_v63  ;;  %v722_v10 = vsel %vm504_vm14, nan, %v721_v4 }
 0x444   :  { %v1870_v30 = vpop.eup %1869 }
 0x445   :  { %v1872_v14 = vpop.eup %1871  ;;  %v616_v15 = vxor.u32 2147483648, %v1870_v30 }
 0x446   :  { %v613_v16 = vxor.u32 2147483648, %v1872_v14 }
 0x447   :  { %v823_v17 = vsel %vm821_vm3, %v616_v15, %v1872_v14  ;;  %v617_v18 = vsel %vm615_vm15, %v616_v15, %v1872_v14 }
 0x448   :  { %v820_v20 = vsel %vm818_vm5, %v1870_v30, %v613_v16  ;;  %v614_v21 = vsel %vm612_vm4, %v1870_v30, %v613_v16 }
 0x449   :  { %v824_v25 = vsel %vm817_vm7, %v820_v20, %v823_v17  ;;  %v618_v29 = vsel %vm611_vm6, %v614_v21, %v617_v18 }
 0x44a   :  { %v825_v31 = vsel %vm608_vm8, nan, %v824_v25  ;;  %v619_v32 = vsel %vm608_vm8, nan, %v618_v29 }
 0x44b   :  { %v1821_v19 = vpack.i.bf16 %v825_v31, %v722_v10 }
 0x44d   :  { %1822 = vrot.lane.b32.xlu0 %v1821_v19, %s1904_s12 }
 0x451   :  { %1476 = vrot.lane.b32.xlu0 %v1992_v26, %s1897_s9  ;;  %v1845_v26 = vld [vmem:[%s2289_s2 + $0xc0] sm:$0xff]  }
 0x452   :  { %1727 = vmatpush3.bf16.msra.mxu1 %v1845_v26 }
 0x453   :  { %1740 = vmatprep.subr.bf16.mxu1 %v1893_v0 }
 0x4bf   :  { %v1823_v33 = vpop.permute.xlu0 %1822 }
 0x4c0   :  { %v1825_v28 = vunpack.i.h.bf16 %v1823_v33  ;;  %v1824_v27 = vunpack.i.l.bf16 %v1823_v33  ;;  %v1856_v33 = vld [vmem:[%s2289_s2 + $0x80] sm:$0xff]  }
 0x4c2   :  { %v835_v35 = vsel %vm834_vm9, %v515_v9, %v1824_v27  ;;  %v836_v34 = vsel %vm834_vm9, %v619_v32, %v1825_v28  ;;  %v910_v9 = vlaneseq }
 0x4c3   :  { %v837_v5 = vpack.c.bf16 %v836_v34, %v835_v35  ;;  %v1316_v34 = vpack.c.bf16 %v2056_v2, %v2053_v62 }
 0x4c4   :  { %v911_v10 = vand.u32 127, %v910_v9 }
 0x4c5   :  { %1721 = vmatmul.mubr.msk.bf16.vlgmr.msra.gmra.mrb[8].mxu0 %vm44_vm1, %v837_v5  ;;  %v1591_v5 = vld [vmem:[%s2291_s3 + $0x9] ss:$0 sm:$0xff] }
 0x4c6   :  { %1736 = vmatprep.mubr.msk.bf16.mxu0 %vm1894_vm0, %v1893_v0  ;;  %1733 = vmatpush3.bf16.msra.mxu0 %v1846_v23  ;;  %vm912_vm10 = vcmp.lt.s32.totalorder %v911_v10, 16 }
 0x4c7   :  { %1734 = vmatprep.subr.bf16.mxu0 %v1893_v0 }
 0x4ca   :  { %1735 = vmatpush3.bf16.msra.mxu0 %v1848_v36 }
 0x4cb   :  { %1748 = vmatprep.subr.bf16.mxu0 %v1893_v0 }
 0x4cd   :  { %1737 = vmatmul.mubr.msk.bf16.vlgmr.msra.gmra.mrb[12].mxu0 %vm44_vm1, %v979_v38 }
 0x4ce   :  { %1752 = vmatprep.mubr.msk.bf16.mxu0 %vm1894_vm0, %v1893_v0  ;;  %1749 = vmatpush3.bf16.msra.mxu0 %v1853_v58 }
 0x4cf   :  { %1750 = vmatprep.subr.bf16.mxu0 %v1893_v0 }
 0x4d2   :  { %1751 = vmatpush3.bf16.msra.mxu0 %v1855_v59 }
 0x4d3   :  { %1768 = vmatprep.subr.bf16.mxu0 %v1893_v0 }
 0x598   :  { %v896_v40 = vpop.f32.mrb[8].mxu0 }
 0x599   :  { %v2168_v41 = vadd.f32 %v1574_v39, %v896_v40  ;;  %v1722_v42 = vpop.f32.mrb[9].mxu0 }
 0x59a   :  { %v899_v43 = vpop.f32.mrb[10].mxu0 }
 0x59b   :  { %v2170_v44 = vadd.f32 %v1574_v39, %v899_v43  ;;  %v1723_v45 = vpop.f32.mrb[11].mxu0  ;;  %v903_v46 = vmul.f32 %v2168_v41, %v2168_v41 }
 0x59d   :  { %v904_v24 = vmul.f32 %v2170_v44, %v2170_v44 }
 0x59f   :  { %v905_v48 = vpack.c.bf16 %v904_v24, %v903_v46 }
 0x5a0   :  { %v1033_v54 = vpop.f32.mrb[12].mxu0 }
 0x5a1   :  { %1729 = vmatmul.mubr.msk.bf16.vlgmr.msra.gmra.mrb[12].mxu1 %vm44_vm1, %v905_v48  ;;  %v1738_v55 = vpop.f32.mrb[13].mxu0 }
 0x5a2   :  { %1741 = vmatpush3.bf16.msra.mxu1 %v1847_v47  ;;  %1744 = vmatprep.mubr.msk.bf16.mxu1 %vm1894_vm0, %v1893_v0  ;;  %v1857_v47 = vld [vmem:[%s2289_s2 + $0x88] sm:$0xff]  }
 0x5a3   :  { %1742 = vmatprep.subr.bf16.mxu1 %v1893_v0 }
 0x5a6   :  { %1743 = vmatpush3.bf16.msra.mxu1 %v1849_v50 }
 0x5a7   :  { %1756 = vmatprep.subr.bf16.mxu1 %v1893_v0 }
 0x5a9   :  { %1745 = vmatmul.mubr.msk.bf16.vlgmr.msra.gmra.mrb[16].mxu1 %vm44_vm1, %v1955_v6  ;;  %v1036_v6 = vpop.f32.mrb[14].mxu0 }
 0x5aa   :  { %1764 = vmatprep.mubr.msk.bf16.mxu1 %vm1894_vm0, %v1893_v0  ;;  %1757 = vmatpush3.bf16.msra.mxu1 %v1850_v52  ;;  %v1739_v57 = vpop.f32.mrb[15].mxu0 }
 0x5ab   :  { %1758 = vmatprep.subr.bf16.mxu1 %v1893_v0 }
 0x5ae   :  { %1759 = vmatpush3.bf16.msra.mxu1 %v1851_v53 }
 0x5af   :  { %1760 = vmatprep.subr.bf16.mxu1 %v1893_v0 }
 0x5b2   :  { %1761 = vmatpush3.bf16.msra.mxu1 %v1852_v56 }
 0x5b3   :  { %1762 = vmatprep.subr.bf16.mxu1 %v1893_v0 }
 0x5b6   :  { %1763 = vmatpush3.bf16.msra.mxu1 %v1854_v3 }
 0x5b7   :  { %1780 = vmatprep.subr.bf16.mxu1 %v1893_v0 }
 0x674   :  { %v962_v60 = vpop.f32.mrb[12].mxu1 }
 0x675   :  { %v963_v61 = vadd.f32 1e-08, %v962_v60  ;;  %v1730_v7 = vpop.f32.mrb[13].mxu1  ;;  %v1859_v60 = vld [vmem:[%s2289_s2 + $0x98] sm:$0xff]  }
 0x676   :  { %v965_v63 = vpop.f32.mrb[14].mxu1 }
 0x677   :  { %1873 = vrsqrt.f32 %v963_v61  ;;  %v966_v1 = vadd.f32 1e-08, %v965_v63  ;;  %v1731_v4 = vpop.f32.mrb[15].mxu1  ;;  %v1860_v63 = vld [vmem:[%s2289_s2 + $0xa0] sm:$0xff]  }
 0x679   :  { %1875 = vrsqrt.f32 %v966_v1 }
 0x67c   :  { %v1086_v11 = vpop.f32.mrb[16].mxu1 }
 0x67d   :  { %v1087_v13 = vadd.f32 %v1086_v11, %v1033_v54  ;;  %v1746_v30 = vpop.f32.mrb[17].mxu1 }
 0x67e   :  { %v1089_v14 = vpop.f32.mrb[18].mxu1 }
 0x67f   :  { %v1098_v15 = vadd.f32 %v1587_v12, %v1087_v13  ;;  %v1090_v16 = vadd.f32 %v1089_v14, %v1036_v6  ;;  %v1747_v17 = vpop.f32.mrb[19].mxu1  ;;  %v1858_v6 = vld [vmem:[%s2289_s2 + $0x90] sm:$0xff]  }
 0x681   :  { %v1874_v18 = vpop.eup %1873  ;;  %v1100_v20 = vmax.f32 %v1098_v15, 0.0  ;;  %v1099_v21 = vadd.f32 %v1587_v12, %v1090_v16 }
 0x682   :  { %v971_v25 = vsel %vm912_vm10, %v1874_v18, 1.0 }
 0x683   :  { %v1876_v29 = vpop.eup %1875  ;;  %v1101_v31 = vmax.f32 %v1099_v21, 0.0  ;;  %v973_v32 = vmul.f32 %v971_v25, %v2168_v41 }
 0x684   :  { %v972_v19 = vsel %vm912_vm10, %v1876_v29, 1.0 }
 0x685   :  { %v1165_v28 = vpack.c.bf16 %v1101_v31, %v1100_v20  ;;  %1468 = vrot.lane.b32.xlu0 %v973_v32, %s1905_s20  ;;  %v974_v27 = vmul.f32 %v972_v19, %v2170_v44  ;;  %v1602_v44 = vld [vmem:[%s2291_s3 + $0x5] ss:$0 sm:$0xff] }
 0x687   :  { %1470 = vrot.lane.b32.xlu1 %v974_v27, %s1905_s20  ;;  %v1102_v35 = vpack.c.bf16 %v974_v27, %v973_v32  ;;  %1765 = vmatmul.mubr.msk.bf16.vlgmr.msra.gmra.mrb[20].mxu1 %vm129_vm2, %v1165_v28  ;;  %v1461_v27 = vpop.permute.xlu1 %1460 }
 0x688   :  { %1781 = vmatpush3.bf16.msra.mxu1 %v1856_v33  ;;  %1782 = vmatprep.mubr.msk.bf16.mxu1 %vm1894_vm0, %v1893_v0 }
 0x689   :  { %1753 = vmatmul.mubr.msk.bf16.vlgmr.msra.gmra.mrb[16].mxu0 %vm44_vm1, %v1102_v35 }
 0x68a   :  { %1769 = vmatpush3.bf16.msra.mxu0 %v1850_v52  ;;  %1776 = vmatprep.mubr.msk.bf16.mxu0 %vm1894_vm0, %v1893_v0 }
 0x68b   :  { %1770 = vmatprep.subr.bf16.mxu0 %v1893_v0  ;;  %v1463_v35 = vpop.permute.xlu1 %1462 }
 0x68e   :  { %1771 = vmatpush3.bf16.msra.mxu0 %v1851_v53 }
 0x68f   :  { %1783 = vmatmul.mubr.msk.bf16.vlgmr.msra.gmra.mrb[24].mxu1 %vm834_vm9, %v1316_v34  ;;  %1772 = vmatprep.subr.bf16.mxu0 %v1893_v0  ;;  %v1477_v34 = vpop.permute.xlu0 %1476 }
 0x692   :  { %1773 = vmatpush3.bf16.msra.mxu0 %v1852_v56 }
 0x693   :  { %1774 = vmatprep.subr.bf16.mxu0 %v1893_v0 }
 0x696   :  { %1775 = vmatpush3.bf16.msra.mxu0 %v1854_v3 }
 0x697   :  { %1786 = vmatprep.subr.bf16.mxu0 %v1893_v0 }
 0x75a   :  { %v1240_v8 = vpop.f32.mrb[20].mxu1 }
 0x75b   :  { %v1241_v26 = vadd.f32 %v1591_v5, %v1240_v8  ;;  %v1766_v23 = vpop.f32.mrb[21].mxu1  ;;  %v1546_v8 = vld [vmem:[%s2291_s3 + $0x3] ss:$0 sm:$0xff] }
 0x75c   :  { %v1156_v36 = vpop.f32.mrb[16].mxu0  ;;  %v1243_v62 = vpop.f32.mrb[22].mxu1  ;;  %v318_v23 = vadd.f32 %v1546_v8, %v2042_v49 }
 0x75d   :  { %v1157_v2 = vadd.f32 %v1587_v12, %v1156_v36  ;;  %v1754_v22 = vpop.f32.mrb[17].mxu0  ;;  %v1597_v37 = vmul.f32 -1.442695, %v1241_v26  ;;  %v1244_v38 = vadd.f32 %v1591_v5, %v1243_v62  ;;  %v1767_v39 = vpop.f32.mrb[23].mxu1  ;;  %v321_v62 = vadd.f32 %v1546_v8, %v2044_v51 }
 0x75e   :  { %v1159_v40 = vpop.f32.mrb[18].mxu0  ;;  %v1469_v26 = vpop.permute.xlu0 %1468 }
 0x75f   :  { %v1160_v41 = vadd.f32 %v1587_v12, %v1159_v40  ;;  %1877 = vpow2.f32 %v1597_v37  ;;  %v1755_v42 = vpop.f32.mrb[19].mxu0  ;;  %v1598_v43 = vmul.f32 -1.442695, %v1244_v38  ;;  %v1163_v45 = vmax.f32 %v1157_v2, 0.0 }
 0x760   :  { %v1506_v2 = vsel %vm44_vm1, %v318_v23, %v1461_v27  ;;  %v1507_v38 = vsel %vm44_vm1, %v321_v62, %v1463_v35 }
 0x761   :  { %v1164_v46 = vmax.f32 %v1160_v41, 0.0  ;;  %1879 = vpow2.f32 %v1598_v43 }
 0x762   :  { %v1367_v24 = vpop.f32.mrb[24].mxu1 }
 0x763   :  { %v1259_v48 = vpack.c.bf16 %v1164_v46, %v1163_v45  ;;  %v1368_v50 = vadd.f32 %v1602_v44, %v1367_v24  ;;  %v1784_v52 = vpop.f32.mrb[25].mxu1 }
 0x764   :  { %v1370_v53 = vpop.f32.mrb[26].mxu1 }
 0x765   :  { %v1371_v54 = vadd.f32 %v1602_v44, %v1370_v53  ;;  %1777 = vmatmul.mubr.msk.bf16.vlgmr.msra.gmra.mrb[20].mxu0 %vm129_vm2, %v1259_v48  ;;  %v1785_v55 = vpop.f32.mrb[27].mxu1  ;;  %v1374_v56 = vmax.f32 %v1368_v50, 0.0 }
 0x766   :  { %1787 = vmatpush3.bf16.msra.mxu0 %v1857_v47  ;;  %1794 = vmatprep.mubr.msk.bf16.mxu0 %vm1894_vm0, %v1893_v0  ;;  %vm1508_vm0 = vcmask 392192  }
 0x767   :  { %v1375_v57 = vmax.f32 %v1371_v54, 0.0  ;;  %1788 = vmatprep.subr.bf16.mxu0 %v1893_v0  ;;  %v1509_v37 = vsel %vm1508_vm0, %v1506_v2, %v1469_v26 }
 0x769   :  { %v1878_v58 = vpop.eup %1877  ;;  %v1376_v3 = vpack.c.bf16 %v1375_v57, %v1374_v56 }
 0x76a   :  { %v1253_v59 = vadd.f32 1.0, %v1878_v58  ;;  %1789 = vmatpush3.bf16.msra.mxu0 %v1858_v6 }
 0x76b   :  { %v1880_v61 = vpop.eup %1879  ;;  %1790 = vmatprep.subr.bf16.mxu0 %v1893_v0 }
 0x76c   :  { %1881 = vrcp.f32 %v1253_v59  ;;  %v1254_v7 = vadd.f32 1.0, %v1880_v61 }
 0x76e   :  { %1883 = vrcp.f32 %v1254_v7  ;;  %1791 = vmatpush3.bf16.msra.mxu0 %v1859_v60 }
 0x76f   :  { %1792 = vmatprep.subr.bf16.mxu0 %v1893_v0  ;;  %v1605_v0 = vld [vmem:[%s2291_s3 + $0x6] ss:$0 sm:$0xff] }
 0x772   :  { %1793 = vmatpush3.bf16.msra.mxu0 %v1860_v63 }
 0x775   :  { %1795 = vmatmul.mubr.msk.bf16.vlgmr.msra.gmra.mrb[24].mxu0 %vm129_vm2, %v1376_v3  ;;  %vm1511_vm2 = vcmask 654336  }
 0x776   :  { %v1882_v1 = vpop.eup %1881  ;;  %v1512_v41 = vsel %vm1511_vm2, %v1509_v37, %v1477_v34 }
 0x777   :  { %1492 = vrot.lane.b32.xlu0 %v1882_v1, %s1904_s12 }
 0x778   :  { %v1884_v4 = vpop.eup %1883 }
 0x779   :  { %1494 = vrot.lane.b32.xlu1 %v1884_v4, %s1904_s12  ;;  %s1906_s12 = smov 112  }
 0x7e9   :  { %v1493_v22 = vpop.permute.xlu0 %1492 }
 0x838   :  { %v1297_v9 = vpop.f32.mrb[20].mxu0 }
 0x839   :  { %v1298_v10 = vadd.f32 %v1591_v5, %v1297_v9  ;;  %v1778_v11 = vpop.f32.mrb[21].mxu0 }
 0x83a   :  { %v1300_v12 = vpop.f32.mrb[22].mxu0 }
 0x83b   :  { %v1600_v13 = vmul.f32 -1.442695, %v1298_v10  ;;  %v1301_v30 = vadd.f32 %v1591_v5, %v1300_v12  ;;  %v1779_v14 = vpop.f32.mrb[23].mxu0  ;;  %v1479_v5 = vpop.permute.xlu1 %1478 }
 0x83d   :  { %1885 = vpow2.f32 %v1600_v13  ;;  %v1601_v15 = vmul.f32 -1.442695, %v1301_v30 }
 0x83f   :  { %1887 = vpow2.f32 %v1601_v15  ;;  %v1471_v36 = vpop.permute.xlu1 %1470 }
 0x840   :  { %v1510_v40 = vsel %vm1508_vm0, %v1507_v38, %v1471_v36 }
 0x841   :  { %v1513_v49 = vsel %vm1511_vm2, %v1510_v40, %v1479_v5 }
 0x843   :  { %v1495_v39 = vpop.permute.xlu1 %1494 }
 0x847   :  { %v1886_v16 = vpop.eup %1885 }
 0x848   :  { %v1310_v17 = vadd.f32 1.0, %v1886_v16  ;;  %v1451_v18 = vpop.f32.mrb[24].mxu0 }
 0x849   :  { %v1888_v20 = vpop.eup %1887  ;;  %v1452_v21 = vadd.f32 %v1605_v0, %v1451_v18  ;;  %v1796_v25 = vpop.f32.mrb[25].mxu0 }
 0x84a   :  { %1889 = vrcp.f32 %v1310_v17  ;;  %v1311_v29 = vadd.f32 1.0, %v1888_v20  ;;  %v1454_v31 = vpop.f32.mrb[26].mxu0 }
 0x84b   :  { %v1455_v32 = vadd.f32 %v1605_v0, %v1454_v31  ;;  %1484 = vrot.lane.b32.xlu0 %v1452_v21, %s1906_s12  ;;  %v1797_v19 = vpop.f32.mrb[27].mxu0 }
 0x84c   :  { %1891 = vrcp.f32 %v1311_v29 }
 0x84d   :  { %1486 = vrot.lane.b32.xlu1 %v1455_v32, %s1906_s12 }
 0x854   :  { %v1890_v33 = vpop.eup %1889 }
 0x855   :  { %1500 = vrot.lane.b32.xlu0 %v1890_v33, %s1907_s6 }
 0x856   :  { %v1892_v28 = vpop.eup %1891 }
 0x857   :  { %1502 = vrot.lane.b32.xlu1 %v1892_v28, %s1907_s6 }
 0x8bd   :  { %v1485_v42 = vpop.permute.xlu0 %1484 }
 0x8be   :  { %v1515_v43 = vsel %vm1514_vm11, %v1512_v41, %v1485_v42  ;;  %v1517_v45 = vsel %vm834_vm9, %v1485_v42, %v1493_v22 }
 0x8bf   :  { %1524 = vst [vmem:[%s2293_s4] sm:$0xff] %v1515_v43  ;;  %v1487_v44 = vpop.permute.xlu1 %1486 }
 0x8c0   :  { %v1516_v51 = vsel %vm1514_vm11, %v1513_v49, %v1487_v44  ;;  %v1518_v47 = vsel %vm834_vm9, %v1487_v44, %v1495_v39 }
 0x8c1   :  { %1526 = vst [vmem:[%s2293_s4 + $0x10] sm:$0xff] %v1516_v51 }
 0x8c7   :  { %v1501_v46 = vpop.permute.xlu0 %1500 }
 0x8c8   :  { %v1520_v24 = vsel %vm1519_vm12, %v1517_v45, %v1501_v46 }
 0x8c9   :  { %v1522_v48 = vsel %vm44_vm1, %v1520_v24, 0.0  ;;  %v1503_v50 = vpop.permute.xlu1 %1502 }
 0x8ca   :  { %1525 = vst [vmem:[%s2293_s4 + $0x8] sm:$0xff] %v1522_v48  ;;  %v1521_v52 = vsel %vm1519_vm12, %v1518_v47, %v1503_v50 }
 0x8cb   :  { %v1523_v53 = vsel %vm44_vm1, %v1521_v52, 0.0 }
 0x8cc   :  { %1527 = vst [vmem:[%s2293_s4 + $0x18] sm:$0xff] %v1523_v53 }

</bundles_post_ra>
